<compile_context>
chip_gen: v6e
topology: v6e:2x2x1
jax: 0.10.0
libtpu: 0.0.40
codegen_flags: <defaults>
</compile_context>

<pallas_src>
import functools

import jax
import jax.numpy as jnp
from jax.experimental import pallas as pl
from jax.experimental.pallas import tpu as pltpu


def _pow(x, g):
    # gamma is a python float (default 2.0); use repeated multiply for integer
    # exponents (matches torch pow semantics, avoids exp/log pow corner cases).
    if float(g).is_integer() and g >= 0:
        out = jnp.ones_like(x)
        for _ in range(int(g)):
            out = out * x
        return out
    return jnp.power(x, g)


def _fusion_partials_kernel(p_ref, t_ref, out_ref, *, alpha, gamma, smooth,
                            n_elems, tm, nb_per_core):
    """Accumulates per-core partial sums [inter, p^2, t^2, focal] as (8,128) slabs."""
    C = 128
    c = pl.program_id(0)          # core / parallel axis
    i = pl.program_id(1)          # row-block (reduction) axis
    blk = c * nb_per_core + i     # global row-block index
    blk_elems = tm * C

    @pl.when(i == 0)
    def _():
        out_ref[...] = jnp.zeros_like(out_ref)

    logits = p_ref[...].astype(jnp.float32)
    t = t_ref[...].astype(jnp.float32)

    def accumulate(mask):
        p = jax.nn.sigmoid(logits)
        one_m_p = 1.0 - p
        pt = p * t
        psq = p * p
        tsq = t * t
        focal = (-alpha * _pow(one_m_p, gamma) * t * jnp.log(p + smooth)
                 - (1.0 - alpha) * _pow(p, gamma) * (1.0 - t)
                 * jnp.log(one_m_p + smooth))
        if mask is not None:
            pt = pt * mask
            psq = psq * mask
            tsq = tsq * mask
            focal = focal * mask

        def fold(x):
            # (TM, 128) -> (TM//8, 8, 128), reduce over leading dim:
            # pure vreg-wise VPU adds, no XLU cross-lane work.
            return jnp.sum(x.reshape(tm // 8, 8, C), axis=0)

        out_ref[0, 0] += fold(pt)
        out_ref[0, 1] += fold(psq)
        out_ref[0, 2] += fold(tsq)
        out_ref[0, 3] += fold(focal)

    # Blocks strictly before the boundary block are fully valid -> fast path.
    full_blocks = n_elems // blk_elems   # python int (compile-time)

    @pl.when(blk < full_blocks)
    def _():
        accumulate(None)

    @pl.when(blk >= full_blocks)
    def _():
        # Tile may contain padding: build the validity mask from iota.
        rem = jnp.int32(n_elems) - blk * jnp.int32(blk_elems)
        local = (jax.lax.broadcasted_iota(jnp.int32, (tm, C), 0) * C
                 + jax.lax.broadcasted_iota(jnp.int32, (tm, C), 1))
        mask = (local < rem).astype(jnp.float32)
        accumulate(mask)


def fusion_loss_pallas(preds, targets, *, lambda_factor=1.0, alpha=0.25,
                       gamma=2.0, smooth=1e-6):
    assert preds.shape == targets.shape
    n = int(preds.size)
    C = 128
    TM_TARGET = 2048                       # ~1 MiB per f32 input block

    rows = -(-n // C)                      # ceil(n / 128)
    rows8 = -(-rows // 8) * 8              # round rows up to sublane multiple
    TM = min(TM_TARGET, rows8)
    nb_total = -(-rows8 // TM)
    NC = 2 if nb_total >= 2 else 1         # use both TensorCores on v7x
    nb_total = -(-nb_total // NC) * NC
    nb_per_core = nb_total // NC
    rows_p = nb_total * TM
    total = rows_p * C

    def to2d(x):
        flat = x.reshape(-1).astype(jnp.float32)
        flat = jnp.pad(flat, (0, total - n))
        return flat.reshape(rows_p, C)

    p2d = to2d(preds)
    t2d = to2d(targets)

    kernel = functools.partial(
        _fusion_partials_kernel,
        alpha=float(alpha), gamma=float(gamma), smooth=float(smooth),
        n_elems=n, tm=TM, nb_per_core=nb_per_core,
    )

    partials = pl.pallas_call(
        kernel,
        out_shape=jax.ShapeDtypeStruct((NC, 4, 8, C), jnp.float32),
        grid=(NC, nb_per_core),
        in_specs=[
            pl.BlockSpec((TM, C), lambda c, i: (c * nb_per_core + i, 0)),
            pl.BlockSpec((TM, C), lambda c, i: (c * nb_per_core + i, 0)),
        ],
        out_specs=pl.BlockSpec((1, 4, 8, C), lambda c, i: (c, 0, 0, 0)),
        compiler_params=pltpu.CompilerParams(
            dimension_semantics=("parallel", "arbitrary")),
    )(p2d, t2d)

    # Final cross-lane reduction + scalar loss math (cheap) in the wrapper.
    sums = jnp.sum(partials, axis=(0, 2, 3))     # (4,)
    inter, p_sq, t_sq, focal_sum = sums[0], sums[1], sums[2], sums[3]
    dice_loss = 1.0 - (2.0 * inter + smooth) / (p_sq + t_sq + smooth)
    focal_mean = focal_sum / n
    return dice_loss + lambda_factor * focal_mean


def fusion_loss_ref(preds, targets, *, lambda_factor=1.0, alpha=0.25,
                    gamma=2.0, smooth=1e-6):
    p = jax.nn.sigmoid(preds.astype(jnp.float32))
    t = targets.astype(jnp.float32)
    inter = jnp.sum(p * t)
    dice = 1.0 - (2.0 * inter + smooth) / (jnp.sum(p * p) + jnp.sum(t * t) + smooth)
    focal = (-alpha * (1.0 - p) ** gamma * t * jnp.log(p + smooth)
             - (1.0 - alpha) * p ** gamma * (1.0 - t) * jnp.log(1.0 - p + smooth))
    return dice + lambda_factor * jnp.mean(focal)


if __name__ == "__main__":
    key = jax.random.PRNGKey(0)
    k1, k2 = jax.random.split(key)

    # Small segmentation-style shapes: batch=2, channels=4, spatial=16x16.
    preds = jax.random.normal(k1, (2, 4, 16, 16), dtype=jnp.float32)
    targets = (jax.random.uniform(k2, (2, 4, 16, 16)) > 0.5).astype(jnp.float32)

    loss = fusion_loss_pallas(preds, targets)
    loss = jax.block_until_ready(loss)

    ref = jax.block_until_ready(fusion_loss_ref(preds, targets))
    assert jnp.allclose(loss, ref, rtol=1e-5, atol=1e-5), (loss, ref)

    print("KERNEL_OK")
</pallas_src>

<mosaic_0001>
module attributes {stable_mosaic.version = 11 : i64} {
  func.func @_fusion_partials_kernel(%arg0: i32, %arg1: i32, %arg2: memref<16x128xf32, #tpu.memory_space<vmem>>, %arg3: memref<16x128xf32, #tpu.memory_space<vmem>>, %arg4: memref<1x4x8x128xf32, #tpu.memory_space<vmem>>) attributes {dimension_semantics = [#tpu.dimension_semantics<parallel>, #tpu.dimension_semantics<arbitrary>], iteration_bounds = array<i64: 1, 1>, scalar_prefetch = 0 : i64, scratch_operands = 0 : i64, tpu.core_type = #tpu.core_type<tc>, window_params = [{transform_indices = @transform_0, window_bounds = array<i64: 16, 128>}, {transform_indices = @transform_1, window_bounds = array<i64: 16, 128>}, {transform_indices = @transform_2, window_bounds = array<i64: 1, 4, 8, 128>}]} {
    %c1_i32 = arith.constant 1 : i32
    %0 = arith.muli %arg0, %c1_i32 : i32
    %1 = arith.addi %0, %arg1 : i32
    %c0_i32 = arith.constant 0 : i32
    %2 = arith.cmpi eq, %arg1, %c0_i32 : i32
    %3 = arith.extui %2 : i1 to i32
    %c0_i32_0 = arith.constant 0 : i32
    %4 = arith.cmpi ne, %3, %c0_i32_0 : i32
    scf.if %4 {
      %cst = arith.constant 0.000000e+00 : f32
      %13 = vector.broadcast %cst : f32 to vector<1x4x8x128xf32>
      %c0_8 = arith.constant 0 : index
      %c0_9 = arith.constant 0 : index
      %c0_10 = arith.constant 0 : index
      %c0_11 = arith.constant 0 : index
      %14 = vector.load %arg4[%c0_8, %c0_9, %c0_10, %c0_11] : memref<1x4x8x128xf32, #tpu.memory_space<vmem>>, vector<1x4x8x128xf32>
      tpu.vector_store %arg4[%c0_8, %c0_9, %c0_10, %c0_11], %13 {strides = array<i32>} : memref<1x4x8x128xf32, #tpu.memory_space<vmem>>, vector<1x4x8x128xf32>,
    } else {
    }
    %c0 = arith.constant 0 : index
    %c0_1 = arith.constant 0 : index
    %5 = vector.load %arg2[%c0, %c0_1] : memref<16x128xf32, #tpu.memory_space<vmem>>, vector<16x128xf32>
    %c0_2 = arith.constant 0 : index
    %c0_3 = arith.constant 0 : index
    %6 = vector.load %arg3[%c0_2, %c0_3] : memref<16x128xf32, #tpu.memory_space<vmem>>, vector<16x128xf32>
    %c1_i32_4 = arith.constant 1 : i32
    %7 = arith.cmpi slt, %1, %c1_i32_4 : i32
    %8 = arith.extui %7 : i1 to i32
    %c0_i32_5 = arith.constant 0 : i32
    %9 = arith.cmpi ne, %8, %c0_i32_5 : i32
    scf.if %9 {
      %13 = arith.negf %5 : vector<16x128xf32>
      %14 = math.exp %13 : vector<16x128xf32>
      %cst = arith.constant 1.000000e+00 : f32
      %15 = vector.broadcast %cst : f32 to vector<16x128xf32>
      %16 = arith.addf %15, %14 : vector<16x128xf32>
      %17 = arith.divf %15, %16 : vector<16x128xf32>
      %cst_8 = arith.constant 1.000000e+00 : f32
      %18 = vector.broadcast %cst_8 : f32 to vector<16x128xf32>
      %19 = arith.subf %18, %17 : vector<16x128xf32>
      %20 = arith.mulf %17, %6 : vector<16x128xf32>
      %21 = arith.mulf %17, %17 : vector<16x128xf32>
      %22 = arith.mulf %6, %6 : vector<16x128xf32>
      %cst_9 = arith.constant 1.000000e+00 : f32
      %23 = vector.broadcast %cst_9 : f32 to vector<16x128xf32>
      %24 = arith.mulf %23, %19 : vector<16x128xf32>
      %25 = arith.mulf %24, %19 : vector<16x128xf32>
      %cst_10 = arith.constant -2.500000e-01 : f32
      %26 = vector.broadcast %cst_10 : f32 to vector<16x128xf32>
      %27 = arith.mulf %26, %25 : vector<16x128xf32>
      %28 = arith.mulf %27, %6 : vector<16x128xf32>
      %cst_11 = arith.constant 9.99999997E-7 : f32
      %29 = vector.broadcast %cst_11 : f32 to vector<16x128xf32>
      %30 = arith.addf %17, %29 : vector<16x128xf32>
      %31 = math.log %30 : vector<16x128xf32>
      %32 = arith.mulf %28, %31 : vector<16x128xf32>
      %cst_12 = arith.constant 1.000000e+00 : f32
      %33 = vector.broadcast %cst_12 : f32 to vector<16x128xf32>
      %34 = arith.mulf %33, %17 : vector<16x128xf32>
      %35 = arith.mulf %34, %17 : vector<16x128xf32>
      %cst_13 = arith.constant 7.500000e-01 : f32
      %36 = vector.broadcast %cst_13 : f32 to vector<16x128xf32>
      %37 = arith.mulf %36, %35 : vector<16x128xf32>
      %cst_14 = arith.constant 1.000000e+00 : f32
      %38 = vector.broadcast %cst_14 : f32 to vector<16x128xf32>
      %39 = arith.subf %38, %6 : vector<16x128xf32>
      %40 = arith.mulf %37, %39 : vector<16x128xf32>
      %cst_15 = arith.constant 9.99999997E-7 : f32
      %41 = vector.broadcast %cst_15 : f32 to vector<16x128xf32>
      %42 = arith.addf %19, %41 : vector<16x128xf32>
      %43 = math.log %42 : vector<16x128xf32>
      %44 = arith.mulf %40, %43 : vector<16x128xf32>
      %45 = arith.subf %32, %44 : vector<16x128xf32>
      %c0_16 = arith.constant 0 : index
      %c0_17 = arith.constant 0 : index
      %c0_18 = arith.constant 0 : index
      %c0_19 = arith.constant 0 : index
      %46 = vector.load %arg4[%c0_16, %c0_17, %c0_18, %c0_19] : memref<1x4x8x128xf32, #tpu.memory_space<vmem>>, vector<1x1x8x128xf32>
      %47 = vector.shape_cast %46 : vector<1x1x8x128xf32> to vector<8x128xf32>
      %48 = vector.shape_cast %20 : vector<16x128xf32> to vector<2x8x128xf32>
      %cst_20 = arith.constant dense<0.000000e+00> : vector<8x128xf32>
      %49 = vector.multi_reduction <add>, %48, %cst_20 [0] : vector<2x8x128xf32> to vector<8x128xf32>
      %50 = arith.addf %47, %49 : vector<8x128xf32>
      %c0_21 = arith.constant 0 : index
      %c0_22 = arith.constant 0 : index
      %c0_23 = arith.constant 0 : index
      %c0_24 = arith.constant 0 : index
      %51 = vector.load %arg4[%c0_21, %c0_22, %c0_23, %c0_24] : memref<1x4x8x128xf32, #tpu.memory_space<vmem>>, vector<1x1x8x128xf32>
      %52 = vector.shape_cast %51 : vector<1x1x8x128xf32> to vector<8x128xf32>
      %53 = vector.shape_cast %50 : vector<8x128xf32> to vector<1x1x8x128xf32>
      tpu.vector_store %arg4[%c0_21, %c0_22, %c0_23, %c0_24], %53 {strides = array<i32>} : memref<1x4x8x128xf32, #tpu.memory_space<vmem>>, vector<1x1x8x128xf32>,
      %c0_25 = arith.constant 0 : index
      %c1 = arith.constant 1 : index
      %c0_26 = arith.constant 0 : index
      %c0_27 = arith.constant 0 : index
      %54 = vector.load %arg4[%c0_25, %c1, %c0_26, %c0_27] : memref<1x4x8x128xf32, #tpu.memory_space<vmem>>, vector<1x1x8x128xf32>
      %55 = vector.shape_cast %54 : vector<1x1x8x128xf32> to vector<8x128xf32>
      %56 = vector.shape_cast %21 : vector<16x128xf32> to vector<2x8x128xf32>
      %cst_28 = arith.constant dense<0.000000e+00> : vector<8x128xf32>
      %57 = vector.multi_reduction <add>, %56, %cst_28 [0] : vector<2x8x128xf32> to vector<8x128xf32>
      %58 = arith.addf %55, %57 : vector<8x128xf32>
      %c0_29 = arith.constant 0 : index
      %c1_30 = arith.constant 1 : index
      %c0_31 = arith.constant 0 : index
      %c0_32 = arith.constant 0 : index
      %59 = vector.load %arg4[%c0_29, %c1_30, %c0_31, %c0_32] : memref<1x4x8x128xf32, #tpu.memory_space<vmem>>, vector<1x1x8x128xf32>
      %60 = vector.shape_cast %59 : vector<1x1x8x128xf32> to vector<8x128xf32>
      %61 = vector.shape_cast %58 : vector<8x128xf32> to vector<1x1x8x128xf32>
      tpu.vector_store %arg4[%c0_29, %c1_30, %c0_31, %c0_32], %61 {strides = array<i32>} : memref<1x4x8x128xf32, #tpu.memory_space<vmem>>, vector<1x1x8x128xf32>,
      %c0_33 = arith.constant 0 : index
      %c2 = arith.constant 2 : index
      %c0_34 = arith.constant 0 : index
      %c0_35 = arith.constant 0 : index
      %62 = vector.load %arg4[%c0_33, %c2, %c0_34, %c0_35] : memref<1x4x8x128xf32, #tpu.memory_space<vmem>>, vector<1x1x8x128xf32>
      %63 = vector.shape_cast %62 : vector<1x1x8x128xf32> to vector<8x128xf32>
      %64 = vector.shape_cast %22 : vector<16x128xf32> to vector<2x8x128xf32>
      %cst_36 = arith.constant dense<0.000000e+00> : vector<8x128xf32>
      %65 = vector.multi_reduction <add>, %64, %cst_36 [0] : vector<2x8x128xf32> to vector<8x128xf32>
      %66 = arith.addf %63, %65 : vector<8x128xf32>
      %c0_37 = arith.constant 0 : index
      %c2_38 = arith.constant 2 : index
      %c0_39 = arith.constant 0 : index
      %c0_40 = arith.constant 0 : index
      %67 = vector.load %arg4[%c0_37, %c2_38, %c0_39, %c0_40] : memref<1x4x8x128xf32, #tpu.memory_space<vmem>>, vector<1x1x8x128xf32>
      %68 = vector.shape_cast %67 : vector<1x1x8x128xf32> to vector<8x128xf32>
      %69 = vector.shape_cast %66 : vector<8x128xf32> to vector<1x1x8x128xf32>
      tpu.vector_store %arg4[%c0_37, %c2_38, %c0_39, %c0_40], %69 {strides = array<i32>} : memref<1x4x8x128xf32, #tpu.memory_space<vmem>>, vector<1x1x8x128xf32>,
      %c0_41 = arith.constant 0 : index
      %c3 = arith.constant 3 : index
      %c0_42 = arith.constant 0 : index
      %c0_43 = arith.constant 0 : index
      %70 = vector.load %arg4[%c0_41, %c3, %c0_42, %c0_43] : memref<1x4x8x128xf32, #tpu.memory_space<vmem>>, vector<1x1x8x128xf32>
      %71 = vector.shape_cast %70 : vector<1x1x8x128xf32> to vector<8x128xf32>
      %72 = vector.shape_cast %45 : vector<16x128xf32> to vector<2x8x128xf32>
      %cst_44 = arith.constant dense<0.000000e+00> : vector<8x128xf32>
      %73 = vector.multi_reduction <add>, %72, %cst_44 [0] : vector<2x8x128xf32> to vector<8x128xf32>
      %74 = arith.addf %71, %73 : vector<8x128xf32>
      %c0_45 = arith.constant 0 : index
      %c3_46 = arith.constant 3 : index
      %c0_47 = arith.constant 0 : index
      %c0_48 = arith.constant 0 : index
      %75 = vector.load %arg4[%c0_45, %c3_46, %c0_47, %c0_48] : memref<1x4x8x128xf32, #tpu.memory_space<vmem>>, vector<1x1x8x128xf32>
      %76 = vector.shape_cast %75 : vector<1x1x8x128xf32> to vector<8x128xf32>
      %77 = vector.shape_cast %74 : vector<8x128xf32> to vector<1x1x8x128xf32>
      tpu.vector_store %arg4[%c0_45, %c3_46, %c0_47, %c0_48], %77 {strides = array<i32>} : memref<1x4x8x128xf32, #tpu.memory_space<vmem>>, vector<1x1x8x128xf32>,
    } else {
    }
    %c1_i32_6 = arith.constant 1 : i32
    %10 = arith.cmpi sge, %1, %c1_i32_6 : i32
    %11 = arith.extui %10 : i1 to i32
    %c0_i32_7 = arith.constant 0 : i32
    %12 = arith.cmpi ne, %11, %c0_i32_7 : i32
    scf.if %12 {
      %c2048_i32 = arith.constant 2048 : i32
      %13 = arith.muli %1, %c2048_i32 : i32
      %c2048_i32_8 = arith.constant 2048 : i32
      %14 = arith.subi %c2048_i32_8, %13 : i32
      %15 = tpu.iota {dimensions = array<i32: 0>} : vector<16x128xi32>
      %c128_i32 = arith.constant 128 : i32
      %16 = vector.broadcast %c128_i32 : i32 to vector<16x128xi32>
      %17 = arith.muli %15, %16 : vector<16x128xi32>
      %18 = tpu.iota {dimensions = array<i32: 1>} : vector<16x128xi32>
      %19 = arith.addi %17, %18 : vector<16x128xi32>
      %20 = vector.broadcast %14 : i32 to vector<16x128xi32>
      %21 = arith.cmpi slt, %19, %20 : vector<16x128xi32>
      %22 = arith.extui %21 : vector<16x128xi1> to vector<16x128xi32>
      %23 = arith.sitofp %22 : vector<16x128xi32> to vector<16x128xf32>
      %24 = arith.negf %5 : vector<16x128xf32>
      %25 = math.exp %24 : vector<16x128xf32>
      %cst = arith.constant 1.000000e+00 : f32
      %26 = vector.broadcast %cst : f32 to vector<16x128xf32>
      %27 = arith.addf %26, %25 : vector<16x128xf32>
      %28 = arith.divf %26, %27 : vector<16x128xf32>
      %cst_9 = arith.constant 1.000000e+00 : f32
      %29 = vector.broadcast %cst_9 : f32 to vector<16x128xf32>
      %30 = arith.subf %29, %28 : vector<16x128xf32>
      %31 = arith.mulf %28, %6 : vector<16x128xf32>
      %32 = arith.mulf %28, %28 : vector<16x128xf32>
      %33 = arith.mulf %6, %6 : vector<16x128xf32>
      %cst_10 = arith.constant 1.000000e+00 : f32
      %34 = vector.broadcast %cst_10 : f32 to vector<16x128xf32>
      %35 = arith.mulf %34, %30 : vector<16x128xf32>
      %36 = arith.mulf %35, %30 : vector<16x128xf32>
      %cst_11 = arith.constant -2.500000e-01 : f32
      %37 = vector.broadcast %cst_11 : f32 to vector<16x128xf32>
      %38 = arith.mulf %37, %36 : vector<16x128xf32>
      %39 = arith.mulf %38, %6 : vector<16x128xf32>
      %cst_12 = arith.constant 9.99999997E-7 : f32
      %40 = vector.broadcast %cst_12 : f32 to vector<16x128xf32>
      %41 = arith.addf %28, %40 : vector<16x128xf32>
      %42 = math.log %41 : vector<16x128xf32>
      %43 = arith.mulf %39, %42 : vector<16x128xf32>
      %cst_13 = arith.constant 1.000000e+00 : f32
      %44 = vector.broadcast %cst_13 : f32 to vector<16x128xf32>
      %45 = arith.mulf %44, %28 : vector<16x128xf32>
      %46 = arith.mulf %45, %28 : vector<16x128xf32>
      %cst_14 = arith.constant 7.500000e-01 : f32
      %47 = vector.broadcast %cst_14 : f32 to vector<16x128xf32>
      %48 = arith.mulf %47, %46 : vector<16x128xf32>
      %cst_15 = arith.constant 1.000000e+00 : f32
      %49 = vector.broadcast %cst_15 : f32 to vector<16x128xf32>
      %50 = arith.subf %49, %6 : vector<16x128xf32>
      %51 = arith.mulf %48, %50 : vector<16x128xf32>
      %cst_16 = arith.constant 9.99999997E-7 : f32
      %52 = vector.broadcast %cst_16 : f32 to vector<16x128xf32>
      %53 = arith.addf %30, %52 : vector<16x128xf32>
      %54 = math.log %53 : vector<16x128xf32>
      %55 = arith.mulf %51, %54 : vector<16x128xf32>
      %56 = arith.subf %43, %55 : vector<16x128xf32>
      %57 = arith.mulf %31, %23 : vector<16x128xf32>
      %58 = arith.mulf %32, %23 : vector<16x128xf32>
      %59 = arith.mulf %33, %23 : vector<16x128xf32>
      %60 = arith.mulf %56, %23 : vector<16x128xf32>
      %c0_17 = arith.constant 0 : index
      %c0_18 = arith.constant 0 : index
      %c0_19 = arith.constant 0 : index
      %c0_20 = arith.constant 0 : index
      %61 = vector.load %arg4[%c0_17, %c0_18, %c0_19, %c0_20] : memref<1x4x8x128xf32, #tpu.memory_space<vmem>>, vector<1x1x8x128xf32>
      %62 = vector.shape_cast %61 : vector<1x1x8x128xf32> to vector<8x128xf32>
      %63 = vector.shape_cast %57 : vector<16x128xf32> to vector<2x8x128xf32>
      %cst_21 = arith.constant dense<0.000000e+00> : vector<8x128xf32>
      %64 = vector.multi_reduction <add>, %63, %cst_21 [0] : vector<2x8x128xf32> to vector<8x128xf32>
      %65 = arith.addf %62, %64 : vector<8x128xf32>
      %c0_22 = arith.constant 0 : index
      %c0_23 = arith.constant 0 : index
      %c0_24 = arith.constant 0 : index
      %c0_25 = arith.constant 0 : index
      %66 = vector.load %arg4[%c0_22, %c0_23, %c0_24, %c0_25] : memref<1x4x8x128xf32, #tpu.memory_space<vmem>>, vector<1x1x8x128xf32>
      %67 = vector.shape_cast %66 : vector<1x1x8x128xf32> to vector<8x128xf32>
      %68 = vector.shape_cast %65 : vector<8x128xf32> to vector<1x1x8x128xf32>
      tpu.vector_store %arg4[%c0_22, %c0_23, %c0_24, %c0_25], %68 {strides = array<i32>} : memref<1x4x8x128xf32, #tpu.memory_space<vmem>>, vector<1x1x8x128xf32>,
      %c0_26 = arith.constant 0 : index
      %c1 = arith.constant 1 : index
      %c0_27 = arith.constant 0 : index
      %c0_28 = arith.constant 0 : index
      %69 = vector.load %arg4[%c0_26, %c1, %c0_27, %c0_28] : memref<1x4x8x128xf32, #tpu.memory_space<vmem>>, vector<1x1x8x128xf32>
      %70 = vector.shape_cast %69 : vector<1x1x8x128xf32> to vector<8x128xf32>
      %71 = vector.shape_cast %58 : vector<16x128xf32> to vector<2x8x128xf32>
      %cst_29 = arith.constant dense<0.000000e+00> : vector<8x128xf32>
      %72 = vector.multi_reduction <add>, %71, %cst_29 [0] : vector<2x8x128xf32> to vector<8x128xf32>
      %73 = arith.addf %70, %72 : vector<8x128xf32>
      %c0_30 = arith.constant 0 : index
      %c1_31 = arith.constant 1 : index
      %c0_32 = arith.constant 0 : index
      %c0_33 = arith.constant 0 : index
      %74 = vector.load %arg4[%c0_30, %c1_31, %c0_32, %c0_33] : memref<1x4x8x128xf32, #tpu.memory_space<vmem>>, vector<1x1x8x128xf32>
      %75 = vector.shape_cast %74 : vector<1x1x8x128xf32> to vector<8x128xf32>
      %76 = vector.shape_cast %73 : vector<8x128xf32> to vector<1x1x8x128xf32>
      tpu.vector_store %arg4[%c0_30, %c1_31, %c0_32, %c0_33], %76 {strides = array<i32>} : memref<1x4x8x128xf32, #tpu.memory_space<vmem>>, vector<1x1x8x128xf32>,
      %c0_34 = arith.constant 0 : index
      %c2 = arith.constant 2 : index
      %c0_35 = arith.constant 0 : index
      %c0_36 = arith.constant 0 : index
      %77 = vector.load %arg4[%c0_34, %c2, %c0_35, %c0_36] : memref<1x4x8x128xf32, #tpu.memory_space<vmem>>, vector<1x1x8x128xf32>
      %78 = vector.shape_cast %77 : vector<1x1x8x128xf32> to vector<8x128xf32>
      %79 = vector.shape_cast %59 : vector<16x128xf32> to vector<2x8x128xf32>
      %cst_37 = arith.constant dense<0.000000e+00> : vector<8x128xf32>
      %80 = vector.multi_reduction <add>, %79, %cst_37 [0] : vector<2x8x128xf32> to vector<8x128xf32>
      %81 = arith.addf %78, %80 : vector<8x128xf32>
      %c0_38 = arith.constant 0 : index
      %c2_39 = arith.constant 2 : index
      %c0_40 = arith.constant 0 : index
      %c0_41 = arith.constant 0 : index
      %82 = vector.load %arg4[%c0_38, %c2_39, %c0_40, %c0_41] : memref<1x4x8x128xf32, #tpu.memory_space<vmem>>, vector<1x1x8x128xf32>
      %83 = vector.shape_cast %82 : vector<1x1x8x128xf32> to vector<8x128xf32>
      %84 = vector.shape_cast %81 : vector<8x128xf32> to vector<1x1x8x128xf32>
      tpu.vector_store %arg4[%c0_38, %c2_39, %c0_40, %c0_41], %84 {strides = array<i32>} : memref<1x4x8x128xf32, #tpu.memory_space<vmem>>, vector<1x1x8x128xf32>,
      %c0_42 = arith.constant 0 : index
      %c3 = arith.constant 3 : index
      %c0_43 = arith.constant 0 : index
      %c0_44 = arith.constant 0 : index
      %85 = vector.load %arg4[%c0_42, %c3, %c0_43, %c0_44] : memref<1x4x8x128xf32, #tpu.memory_space<vmem>>, vector<1x1x8x128xf32>
      %86 = vector.shape_cast %85 : vector<1x1x8x128xf32> to vector<8x128xf32>
      %87 = vector.shape_cast %60 : vector<16x128xf32> to vector<2x8x128xf32>
      %cst_45 = arith.constant dense<0.000000e+00> : vector<8x128xf32>
      %88 = vector.multi_reduction <add>, %87, %cst_45 [0] : vector<2x8x128xf32> to vector<8x128xf32>
      %89 = arith.addf %86, %88 : vector<8x128xf32>
      %c0_46 = arith.constant 0 : index
      %c3_47 = arith.constant 3 : index
      %c0_48 = arith.constant 0 : index
      %c0_49 = arith.constant 0 : index
      %90 = vector.load %arg4[%c0_46, %c3_47, %c0_48, %c0_49] : memref<1x4x8x128xf32, #tpu.memory_space<vmem>>, vector<1x1x8x128xf32>
      %91 = vector.shape_cast %90 : vector<1x1x8x128xf32> to vector<8x128xf32>
      %92 = vector.shape_cast %89 : vector<8x128xf32> to vector<1x1x8x128xf32>
      tpu.vector_store %arg4[%c0_46, %c3_47, %c0_48, %c0_49], %92 {strides = array<i32>} : memref<1x4x8x128xf32, #tpu.memory_space<vmem>>, vector<1x1x8x128xf32>,
    } else {
    }
    return
  }
  func.func @transform_0(%arg0: i32, %arg1: i32) -> (i32, i32) {
    %c1_i32 = arith.constant 1 : i32
    %0 = arith.muli %arg0, %c1_i32 : i32
    %1 = arith.addi %0, %arg1 : i32
    %c0_i32 = arith.constant 0 : i32
    %c0_i32_0 = arith.constant 0 : i32
    return %1, %c0_i32 : i32, i32
  }
  func.func @transform_1(%arg0: i32, %arg1: i32) -> (i32, i32) {
    %c1_i32 = arith.constant 1 : i32
    %0 = arith.muli %arg0, %c1_i32 : i32
    %1 = arith.addi %0, %arg1 : i32
    %c0_i32 = arith.constant 0 : i32
    %c0_i32_0 = arith.constant 0 : i32
    return %1, %c0_i32 : i32, i32
  }
  func.func @transform_2(%arg0: i32, %arg1: i32) -> (i32, i32, i32, i32) {
    %c0_i32 = arith.constant 0 : i32
    %c0_i32_0 = arith.constant 0 : i32
    %c0_i32_1 = arith.constant 0 : i32
    %c0_i32_2 = arith.constant 0 : i32
    return %arg0, %c0_i32, %c0_i32_0, %c0_i32_1 : i32, i32, i32, i32
  }
}

</mosaic_0001>

<bundles_post_ra>
// kernel: tpu_custom_call.1
= control target key start
LH: loop header
LB: loop body
LE: loop exit
PB: predicated region body
PF: predicated region fallthrough
CT: control target
= control target key end

     0   :  { %7 = vsyncpa [#allocation3], 0  ;;  %s387_s0 = inlined_call_operand.hbm [shape: f32[16,128], index: 0, kind: input, shape index: {}]   ;;  %s388_s1 = inlined_call_operand.hbm [shape: f32[16,128], index: 1, kind: input, shape index: {}]   ;;  %s389_s2 = inlined_call_operand.hbm [shape: f32[1,4,8,128], index: 2, kind: output, shape index: {}]  }
   0x1   :  { %8 = vsyncpa [#allocation6], 0 }
   0x2   :  { %9 = vsyncpa [#allocation4], 0  ;;  %s349_s9 = smov [#allocation2]  }
   0x3   :  { %s19_s10 = sshll.u32 %s349_s9, 4  ;;  %s20_s10 = int_to_ptr.vmem [resolvable:$true] %s19_s10 }
   0x4   :  { %s291_s11 = scalar_lea.vmem %s20_s10, 256  ;;  %p296_p1 = scmp.lt.s32.totalorder %s20_s10, %s20_s10 }
   0x5   :  { %p292_p0 = scmp.ne.s32.totalorder %s20_s10, %s291_s11  ;;  %p297_p2 = scmp.lt.s32.totalorder %s291_s11, %s291_s11 }
   0x7   :  { %p298_p3 = por %p297_p2, %p296_p1 }
   0x9   :  { %p299_p4 = pnand %p298_p3, %p292_p0 }
   0xb   :  { %302 = shalt.err (!%p299_p4)
}
   0xc   :  { %s350_s12 = smov 128   ;;  %s351_s13 = smov 8  }
   0xd   :  { %25 = dma.hbm_to_vmem [thread:$0]  %s387_s0, 256, %s20_s10, [#allocation3], %s350_s12, %s350_s12, %s351_s13  }
   0xe   :  { %s352_s16 = smov [#allocation5]  }
   0xf   :  { %s35_s17 = sshll.u32 %s352_s16, 4  ;;  %s36_s17 = int_to_ptr.vmem [resolvable:$true] %s35_s17 }
  0x10   :  { %s311_s18 = scalar_lea.vmem %s36_s17, 256  ;;  %p316_p6 = scmp.lt.s32.totalorder %s36_s17, %s36_s17 }
  0x11   :  { %p312_p5 = scmp.ne.s32.totalorder %s36_s17, %s311_s18  ;;  %p317_p7 = scmp.lt.s32.totalorder %s311_s18, %s311_s18 }
  0x13   :  { %p318_p8 = por %p317_p7, %p316_p6 }
  0x15   :  { %p319_p9 = pnand %p318_p8, %p312_p5 }
  0x17   :  { %322 = shalt.err (!%p319_p9)
}
  0x18   :  { %41 = dma.hbm_to_vmem [thread:$0]  %s388_s1, 256, %s36_s17, [#allocation6], %s350_s12, %s350_s12, %s351_s13  }
  0x19   :  { %343 = dma.done.wait [#allocation3], 256  }
  0x1a   :  { %344 = vsyncadd [#allocation3], 4294967040 }
  0x1b   :  { %345 = dma.done.wait [#allocation6], 256  }
  0x1c   :  { %346 = vsyncadd [#allocation6], 4294967040  ;;  %v61_v0 = vld [vmem:[#allocation2] sm:$0xff]  ;;  %v62_v1 = vld [vmem:[#allocation2 + $0x8] sm:$0xff]  ;;  %s353_s0 = smov [#allocation7]  }
  0x1d   :  { %v63_v2 = vld [vmem:[#allocation5] sm:$0xff]  ;;  %v64_v3 = vld [vmem:[#allocation5 + $0x8] sm:$0xff]  ;;  %v255_v4 = vmul.f32 -1.442695, %v61_v0  ;;  %v256_v5 = vmul.f32 -1.442695, %v62_v1 }
  0x1e   :  { %v87_v6 = vmul.f32 %v63_v2, %v63_v2  ;;  %v88_v7 = vmul.f32 %v64_v3, %v64_v3  ;;  %v105_v32 = vsub.f32 1.0, %v63_v2  ;;  %v106_v35 = vsub.f32 1.0, %v64_v3  ;;  %s242_s1 = sshll.u32 %s353_s0, 4  ;;  %s243_s1 = int_to_ptr.vmem [resolvable:$true] %s242_s1 }
  0x1f   :  { %267 = vpow2.f32 %v255_v4  ;;  %s323_s21 = scalar_lea.vmem %s243_s1, 512  ;;  %p328_p11 = scmp.lt.s32.totalorder %s243_s1, %s243_s1 }
  0x20   :  { %269 = vpow2.f32 %v256_v5  ;;  %v130_v8 = vadd.f32 %v88_v7, %v87_v6  ;;  %p324_p10 = scmp.ne.s32.totalorder %s243_s1, %s323_s21  ;;  %p329_p12 = scmp.lt.s32.totalorder %s323_s21, %s323_s21 }
  0x22   :  { %132 = vst [vmem:[#allocation7 + $0x10] sm:$0xff] %v130_v8  ;;  %p330_p13 = por %p329_p12, %p328_p11 }
  0x24   :  { %p331_p0 = pnand %p330_p13, %p324_p10 }
  0x2c   :  { %v268_v9 = vpop.eup %267 }
  0x2d   :  { %v270_v10 = vpop.eup %269  ;;  %v75_v11 = vadd.f32 1.0, %v268_v9 }
  0x2e   :  { %v76_v12 = vadd.f32 1.0, %v270_v10 }
  0x2f   :  { %271 = vrcp.f32 %v75_v11 }
  0x30   :  { %273 = vrcp.f32 %v76_v12 }
  0x3c   :  { %v272_v13 = vpop.eup %271 }
  0x3d   :  { %v274_v14 = vpop.eup %273  ;;  %v83_v15 = vmul.f32 %v272_v13, %v63_v2  ;;  %v85_v16 = vmul.f32 %v272_v13, %v272_v13  ;;  %v81_v17 = vsub.f32 1.0, %v272_v13  ;;  %v95_v18 = vadd.f32 1e-06, %v272_v13 }
  0x3e   :  { %v84_v19 = vmul.f32 %v274_v14, %v64_v3  ;;  %v86_v20 = vmul.f32 %v274_v14, %v274_v14  ;;  %v82_v21 = vsub.f32 1.0, %v274_v14  ;;  %v96_v22 = vadd.f32 1e-06, %v274_v14 }
  0x3f   :  { %275 = vlog2.f32 %v95_v18  ;;  %v109_v23 = vadd.f32 1e-06, %v81_v17  ;;  %v89_v27 = vmul.f32 %v81_v17, %v81_v17  ;;  %v103_v31 = vmul.f32 0.75, %v85_v16 }
  0x40   :  { %v120_v24 = vadd.f32 %v84_v19, %v83_v15  ;;  %v125_v25 = vadd.f32 %v86_v20, %v85_v16  ;;  %277 = vlog2.f32 %v96_v22  ;;  %v110_v26 = vadd.f32 1e-06, %v82_v21 }
  0x41   :  { %279 = vlog2.f32 %v109_v23  ;;  %v90_v28 = vmul.f32 %v82_v21, %v82_v21  ;;  %v91_v29 = vmul.f32 -0.25, %v89_v27  ;;  %v104_v34 = vmul.f32 0.75, %v86_v20 }
  0x42   :  { %122 = vst [vmem:[#allocation7] sm:$0xff] %v120_v24  ;;  %127 = vst [vmem:[#allocation7 + $0x8] sm:$0xff] %v125_v25  ;;  %281 = vlog2.f32 %v110_v26  ;;  %v107_v41 = vmul.f32 %v105_v32, %v103_v31 }
  0x43   :  { %v92_v30 = vmul.f32 -0.25, %v90_v28  ;;  %v93_v36 = vmul.f32 %v91_v29, %v63_v2  ;;  %v108_v43 = vmul.f32 %v106_v35, %v104_v34 }
  0x45   :  { %v94_v39 = vmul.f32 %v92_v30, %v64_v3 }
  0x4c   :  { %v276_v33 = vpop.eup %275 }
  0x4d   :  { %v98_v37 = vmul.f32 0.6931472, %v276_v33  ;;  %v278_v38 = vpop.eup %277 }
  0x4e   :  { %v100_v40 = vmul.f32 0.6931472, %v278_v38  ;;  %v280_v42 = vpop.eup %279 }
  0x4f   :  { %v282_v44 = vpop.eup %281  ;;  %v101_v45 = vmul.f32 %v98_v37, %v93_v36  ;;  %v112_v46 = vmul.f32 0.6931472, %v280_v42 }
  0x50   :  { %v102_v47 = vmul.f32 %v100_v40, %v94_v39  ;;  %v114_v48 = vmul.f32 0.6931472, %v282_v44 }
  0x51   :  { %v115_v49 = vmul.f32 %v112_v46, %v107_v41 }
  0x52   :  { %v116_v50 = vmul.f32 %v114_v48, %v108_v43 }
  0x53   :  { %v117_v51 = vsub.f32 %v101_v45, %v115_v49 }
  0x54   :  { %v118_v52 = vsub.f32 %v102_v47, %v116_v50 }
  0x56   :  { %v135_v53 = vadd.f32 %v118_v52, %v117_v51 }
  0x58   :  { %137 = vst [vmem:[#allocation7 + $0x18] sm:$0xff] %v135_v53 }
  0x59   :  { %334 = shalt.err (!%p331_p0)
}
  0x5a   :  { %248 = dma.vmem_to_hbm [thread:$0]  %s243_s1, 512, %s389_s2, [#allocation4], %s350_s12, %s350_s12, %s351_s13  }
  0x5b   :  { %347 = dma.done.wait [#allocation4], 512  }
  0x5c   :  { %348 = vsyncadd [#allocation4], 4294966784 }
  0x5d   :  { %252 = vsyncpa [#allocation3], 1 }
  0x5e   :  { %253 = vsyncpa [#allocation6], 1 }
  0x5f   :  { %254 = vsyncpa [#allocation4], 1 }

</bundles_post_ra>
